<compile_context>
chip_gen: v7x
topology: tpu7x:2x2x1
jax: 0.10.0
libtpu: 0.0.40
codegen_flags: <defaults>
</compile_context>

<pallas_src>
import jax
import jax.numpy as jnp
from jax import lax
from jax.experimental import pallas as pl
from jax.experimental.pallas import tpu as pltpu


def _graph_learning_kernel(w_score_ref, a_score_ref, w_out_ref, a_out_ref):
    # A = sigmoid(A_score); clamp is a no-op since sigmoid lands in [0,1].
    a = jax.nn.sigmoid(a_score_ref[...].astype(jnp.float32))
    a_out_ref[...] = a.astype(a_out_ref.dtype)

    w = jax.nn.sigmoid(w_score_ref[...].astype(jnp.float32))
    is_diag = pl.program_id(0) == pl.program_id(1)

    # Square tiles + identical row/col tiling: only (i == i) grid tiles touch the
    # global diagonal, and there the global diagonal is the local (row == col)
    # diagonal. Mask first, then a single store (no write-after-write).
    @pl.when(is_diag)
    def _():
        tm, tn = w_out_ref.shape
        row = lax.broadcasted_iota(jnp.int32, (tm, tn), 0)
        col = lax.broadcasted_iota(jnp.int32, (tm, tn), 1)
        w_out_ref[...] = jnp.where(row == col, 0.0, w).astype(w_out_ref.dtype)

    @pl.when(jnp.logical_not(is_diag))
    def _():
        w_out_ref[...] = w.astype(w_out_ref.dtype)


def _pick_tile(n: int) -> int:
    """Fixed square tile; ragged edges are handled by a cdiv grid + masked writeback.

    512 (1 MiB f32 tile, ~8 MiB resident double-buffered) is ~85% of HBM roofline
    and fits the scoped-VMEM default on v5e/v6e/v7x. Small n gets a single
    full-array block (the only legal shape below the (8,128) minimum).
    """
    for t in (512, 256, 128):
        if n >= t:
            return t
    return n


def graph_learning_forward(w_score: jax.Array, a_score: jax.Array):
    """Runs the GraphLearningModule forward pass on TPU via Pallas.

    Args:
      w_score: [num_nodes, num_nodes] intra-slice scores (any float dtype).
      a_score: [num_nodes, num_nodes] inter-slice scores (any float dtype).
    Returns:
      (W, A): both [num_nodes, num_nodes] in the input dtype; diag(W) == 0.
    """
    assert w_score.shape == a_score.shape and w_score.ndim == 2
    n = w_score.shape[0]
    assert w_score.shape[1] == n, "adjacency scores must be square"

    t = _pick_tile(n)
    grid = (pl.cdiv(n, t), pl.cdiv(n, t))
    spec = pl.BlockSpec((t, t), lambda i, j: (i, j))

    out_shape = (
        jax.ShapeDtypeStruct((n, n), w_score.dtype),
        jax.ShapeDtypeStruct((n, n), a_score.dtype),
    )

    bytes_in = n * n * (w_score.dtype.itemsize + a_score.dtype.itemsize)
    bytes_out = bytes_in  # outputs mirror input dtypes
    cost = pl.CostEstimate(
        flops=4 * n * n,                 # selects / casts (elementwise)
        transcendentals=2 * n * n,       # two sigmoids per element
        bytes_accessed=bytes_in + bytes_out,
    )

    return pl.pallas_call(
        _graph_learning_kernel,
        out_shape=out_shape,
        grid=grid,
        in_specs=[spec, spec],
        out_specs=(spec, spec),
        compiler_params=pltpu.CompilerParams(
            dimension_semantics=("parallel", "parallel")),
        cost_estimate=cost,
    )(w_score, a_score)


def _reference(w_score, a_score, out_dtype):
    n = w_score.shape[0]
    W_ref = jax.nn.sigmoid(w_score.astype(jnp.float32))
    W_ref = W_ref * (1.0 - jnp.eye(n, dtype=jnp.float32))
    A_ref = jax.nn.sigmoid(a_score.astype(jnp.float32))
    return W_ref.astype(out_dtype), A_ref.astype(out_dtype)


if __name__ == "__main__":
    key = jax.random.PRNGKey(0)

    # Case 1: tiny n=16 (typical module usage) -> single full-array block.
    # Case 2: n=200 f32 -> 2x2 grid of 128x128 tiles with ragged (cdiv-masked)
    #         edges; exercises the diagonal pl.when guard and masked writeback.
    # Case 3: n=200 bf16 -> in-kernel cast + bf16 HBM I/O path.
    cases = ((16, jnp.float32, 1e-6), (200, jnp.float32, 1e-6), (200, jnp.bfloat16, 1e-2))
    for num_nodes, dtype, atol in cases:
        key, k_w, k_a = jax.random.split(key, 3)
        W_score = jax.random.normal(k_w, (num_nodes, num_nodes), dtype=jnp.float32).astype(dtype)
        A_score = jax.random.normal(k_a, (num_nodes, num_nodes), dtype=jnp.float32).astype(dtype)

        W, A = graph_learning_forward(W_score, A_score)
        jax.block_until_ready((W, A))

        W_ref, A_ref = _reference(W_score, A_score, dtype)
        assert W.dtype == dtype and A.dtype == dtype
        assert jnp.allclose(W.astype(jnp.float32), W_ref.astype(jnp.float32),
                            atol=atol), f"W mismatch (n={num_nodes}, {dtype})"
        assert jnp.allclose(A.astype(jnp.float32), A_ref.astype(jnp.float32),
                            atol=atol), f"A mismatch (n={num_nodes}, {dtype})"
        assert jnp.all(jnp.diag(W).astype(jnp.float32) == 0.0), (
            f"diagonal not zeroed (n={num_nodes}, {dtype})")

    print("KERNEL_OK")
</pallas_src>

<mosaic_0001>
module attributes {stable_mosaic.version = 11 : i64} {
  func.func @_graph_learning_kernel(%arg0: i32, %arg1: i32, %arg2: memref<16x16xf32, #tpu.memory_space<vmem>>, %arg3: memref<16x16xf32, #tpu.memory_space<vmem>>, %arg4: memref<16x16xf32, #tpu.memory_space<vmem>>, %arg5: memref<16x16xf32, #tpu.memory_space<vmem>>) attributes {dimension_semantics = [#tpu.dimension_semantics<parallel>, #tpu.dimension_semantics<parallel>], iteration_bounds = array<i64: 1, 1>, scalar_prefetch = 0 : i64, scratch_operands = 0 : i64, tpu.core_type = #tpu.core_type<tc>, window_params = [{transform_indices = @transform_0, window_bounds = array<i64: 16, 16>}, {transform_indices = @transform_1, window_bounds = array<i64: 16, 16>}, {transform_indices = @transform_2, window_bounds = array<i64: 16, 16>}, {transform_indices = @transform_3, window_bounds = array<i64: 16, 16>}]} {
    %c0 = arith.constant 0 : index
    %c0_0 = arith.constant 0 : index
    %0 = vector.load %arg3[%c0, %c0_0] : memref<16x16xf32, #tpu.memory_space<vmem>>, vector<16x16xf32>
    %1 = arith.negf %0 : vector<16x16xf32>
    %2 = math.exp %1 : vector<16x16xf32>
    %cst = arith.constant 1.000000e+00 : f32
    %3 = vector.broadcast %cst : f32 to vector<16x16xf32>
    %4 = arith.addf %3, %2 : vector<16x16xf32>
    %5 = arith.divf %3, %4 : vector<16x16xf32>
    %c0_1 = arith.constant 0 : index
    %c0_2 = arith.constant 0 : index
    %6 = vector.load %arg5[%c0_1, %c0_2] : memref<16x16xf32, #tpu.memory_space<vmem>>, vector<16x16xf32>
    tpu.vector_store %arg5[%c0_1, %c0_2], %5 {strides = array<i32>} : memref<16x16xf32, #tpu.memory_space<vmem>>, vector<16x16xf32>,
    %c0_3 = arith.constant 0 : index
    %c0_4 = arith.constant 0 : index
    %7 = vector.load %arg2[%c0_3, %c0_4] : memref<16x16xf32, #tpu.memory_space<vmem>>, vector<16x16xf32>
    %8 = arith.negf %7 : vector<16x16xf32>
    %9 = math.exp %8 : vector<16x16xf32>
    %cst_5 = arith.constant 1.000000e+00 : f32
    %10 = vector.broadcast %cst_5 : f32 to vector<16x16xf32>
    %11 = arith.addf %10, %9 : vector<16x16xf32>
    %12 = arith.divf %10, %11 : vector<16x16xf32>
    %13 = arith.cmpi eq, %arg0, %arg1 : i32
    %14 = arith.extui %13 : i1 to i32
    %c0_i32 = arith.constant 0 : i32
    %15 = arith.cmpi ne, %14, %c0_i32 : i32
    scf.if %15 {
      %19 = tpu.iota {dimensions = array<i32: 0>} : vector<16x16xi32>
      %20 = tpu.iota {dimensions = array<i32: 1>} : vector<16x16xi32>
      %21 = arith.cmpi eq, %19, %20 : vector<16x16xi32>
      %cst_7 = arith.constant 0.000000e+00 : f32
      %22 = vector.broadcast %cst_7 : f32 to vector<16x16xf32>
      %23 = arith.select %21, %22, %12 : vector<16x16xi1>, vector<16x16xf32>
      %c0_8 = arith.constant 0 : index
      %c0_9 = arith.constant 0 : index
      %24 = vector.load %arg4[%c0_8, %c0_9] : memref<16x16xf32, #tpu.memory_space<vmem>>, vector<16x16xf32>
      tpu.vector_store %arg4[%c0_8, %c0_9], %23 {strides = array<i32>} : memref<16x16xf32, #tpu.memory_space<vmem>>, vector<16x16xf32>,
    } else {
    }
    %true = arith.constant true
    %16 = arith.xori %13, %true : i1
    %17 = arith.extui %16 : i1 to i32
    %c0_i32_6 = arith.constant 0 : i32
    %18 = arith.cmpi ne, %17, %c0_i32_6 : i32
    scf.if %18 {
      %c0_7 = arith.constant 0 : index
      %c0_8 = arith.constant 0 : index
      %19 = vector.load %arg4[%c0_7, %c0_8] : memref<16x16xf32, #tpu.memory_space<vmem>>, vector<16x16xf32>
      tpu.vector_store %arg4[%c0_7, %c0_8], %12 {strides = array<i32>} : memref<16x16xf32, #tpu.memory_space<vmem>>, vector<16x16xf32>,
    } else {
    }
    return
  }
  func.func @transform_0(%arg0: i32, %arg1: i32) -> (i32, i32) {
    %c0_i32 = arith.constant 0 : i32
    return %arg0, %arg1 : i32, i32
  }
  func.func @transform_1(%arg0: i32, %arg1: i32) -> (i32, i32) {
    %c0_i32 = arith.constant 0 : i32
    return %arg0, %arg1 : i32, i32
  }
  func.func @transform_2(%arg0: i32, %arg1: i32) -> (i32, i32) {
    %c0_i32 = arith.constant 0 : i32
    return %arg0, %arg1 : i32, i32
  }
  func.func @transform_3(%arg0: i32, %arg1: i32) -> (i32, i32) {
    %c0_i32 = arith.constant 0 : i32
    return %arg0, %arg1 : i32, i32
  }
}

</mosaic_0001>

<bundles_post_ra>
// kernel: tpu_custom_call.1
= control target key start
LH: loop header
LB: loop body
LE: loop exit
PB: predicated region body
PF: predicated region fallthrough
CT: control target
= control target key end

     0   :  { %9 = vsyncpa [#allocation3], 0  ;;  %s349_s0 = inlined_call_operand.hbm [shape: f32[16,16], index: 0, kind: input, shape index: {}]   ;;  %s350_s1 = inlined_call_operand.hbm [shape: f32[16,16], index: 1, kind: input, shape index: {}]   ;;  %s351_s2 = inlined_call_operand.hbm [shape: f32[16,16], index: 2, kind: output, shape index: {0}]   ;;  %s352_s3 = inlined_call_operand.hbm [shape: f32[16,16], index: 3, kind: output, shape index: {1}]  }
   0x1   :  { %10 = vsyncpa [#allocation6], 0 }
   0x2   :  { %11 = vsyncpa [#allocation4], 0 }
   0x3   :  { %12 = vsyncpa [#allocation9], 0  ;;  %s251_s12 = smov [#allocation2]   ;;  %s155_s16 = scalar_lea.hbm %s349_s0, 256 }
   0x4   :  { %s18_s13 = sshll.u32 %s251_s12, 4  ;;  %p156_p0 = scmp.ne.s32.totalorder %s349_s0, %s155_s16  ;;  %s19_s13 = int_to_ptr.vmem [resolvable:$true] %s18_s13 }
   0x5   :  { %p159_p1 = scmp.lt.u32.totalorder %s155_s16, %s349_s0 }
   0x7   :  { %p161_p2 = pnand %p159_p1, %p156_p0 }
   0x9   :  { %164 = shalt.err (!%p161_p2)
}
   0xa   :  { %s165_s21 = scalar_lea.vmem %s19_s13, 256  ;;  %p170_p4 = scmp.lt.s32.totalorder %s19_s13, %s19_s13 }
   0xb   :  { %p166_p3 = scmp.ne.s32.totalorder %s19_s13, %s165_s21  ;;  %p171_p5 = scmp.lt.s32.totalorder %s165_s21, %s165_s21 }
   0xd   :  { %p172_p6 = por %p171_p5, %p170_p4 }
   0xf   :  { %p173_p7 = pnand %p172_p6, %p166_p3 }
  0x11   :  { %176 = shalt.err (!%p173_p7)
}
  0x12   :  { %s252_s22 = smov 128   ;;  %s253_s23 = smov 8  }
  0x13   :  { %24 = dma.hbm_to_vmem [thread:$0]  %s349_s0, 256, %s19_s13, [#allocation3], %s252_s22, %s252_s22, %s253_s23  }
  0x14   :  { %s254_s26 = smov [#allocation5]   ;;  %s177_s30 = scalar_lea.hbm %s350_s1, 256 }
  0x15   :  { %s30_s27 = sshll.u32 %s254_s26, 4  ;;  %p178_p8 = scmp.ne.s32.totalorder %s350_s1, %s177_s30  ;;  %s31_s27 = int_to_ptr.vmem [resolvable:$true] %s30_s27 }
  0x16   :  { %p181_p9 = scmp.lt.u32.totalorder %s177_s30, %s350_s1 }
  0x18   :  { %p183_p10 = pnand %p181_p9, %p178_p8 }
  0x1a   :  { %186 = shalt.err (!%p183_p10)
}
  0x1b   :  { %s187_s8 = scalar_lea.vmem %s31_s27, 256  ;;  %p192_p12 = scmp.lt.s32.totalorder %s31_s27, %s31_s27 }
  0x1c   :  { %p188_p11 = scmp.ne.s32.totalorder %s31_s27, %s187_s8  ;;  %p193_p13 = scmp.lt.s32.totalorder %s187_s8, %s187_s8 }
  0x1e   :  { %p194_p0 = por %p193_p13, %p192_p12 }
  0x20   :  { %p195_p1 = pnand %p194_p0, %p188_p11 }
  0x22   :  { %198 = shalt.err (!%p195_p1)
}
  0x23   :  { %36 = dma.hbm_to_vmem [thread:$0]  %s350_s1, 256, %s31_s27, [#allocation6], %s252_s22, %s252_s22, %s253_s23  }
  0x24   :  { %243 = dma.done.wait [#allocation3], 256  }
  0x25   :  { %244 = vsyncadd [#allocation3], 4294967040 }
  0x26   :  { %245 = dma.done.wait [#allocation6], 256  }
  0x27   :  { %246 = vsyncadd [#allocation6], 4294967040  ;;  %v43_v0 = vld [vmem:[#allocation5] sm:$0xff]  ;;  %v44_v1 = vld [vmem:[#allocation5 + $0x8] sm:$0xff]  ;;  %v78_v13 = vlaneseq  ;;  %s255_s1 = smov [#allocation8]   ;;  %vm57_vm0 = vcmask 130048  }
  0x28   :  { %v60_v2 = vld [vmem:[#allocation2] sm:$0xff]  ;;  %v129_v3 = vmul.f32 -1.442695, %v43_v0  ;;  %v130_v4 = vmul.f32 -1.442695, %v44_v1  ;;  %v61_v6 = vld [vmem:[#allocation2 + $0x8] sm:$0xff] }
  0x29   :  { %v131_v5 = vmul.f32 -1.442695, %v60_v2  ;;  %v132_v7 = vmul.f32 -1.442695, %v61_v6  ;;  %v79_v17 = vshrl.u32 %v78_v13, 7  ;;  %v82_v18 = vand.u32 127, %v78_v13 }
  0x2a   :  { %139 = vpow2.f32 %v129_v3  ;;  %s112_s10 = sshll.u32 %s255_s1, 4  ;;  %s256_s11 = smov [#allocation7]   ;;  %s113_s10 = int_to_ptr.vmem [resolvable:$true] %s112_s10 }
  0x2b   :  { %141 = vpow2.f32 %v130_v4  ;;  %v80_v19 = vadd.s32 8, %v79_v17  ;;  %s100_s12 = sshll.u32 %s256_s11, 4  ;;  %vm83_vm1 = vcmp.eq.s32.totalorder %v79_v17, %v82_v18  ;;  %s199_s13 = scalar_lea.vmem %s113_s10, 256  ;;  %s309_s12 = int_to_ptr.vmem [resolvable:$true] %s100_s12 }
  0x2c   :  { %143 = vpow2.f32 %v131_v5  ;;  %p200_p2 = scmp.ne.s32.totalorder %s113_s10, %s199_s13  ;;  %p204_p3 = scmp.lt.s32.totalorder %s113_s10, %s113_s10 }
  0x2d   :  { %145 = vpow2.f32 %v132_v7  ;;  %vm84_vm2 = vcmp.eq.s32.totalorder %v80_v19, %v82_v18  ;;  %p205_p4 = scmp.lt.s32.totalorder %s199_s13, %s199_s13 }
  0x2f   :  { %p206_p5 = por %p205_p4, %p204_p3 }
  0x31   :  { %p207_p6 = pnand %p206_p5, %p200_p2 }
  0x34   :  { %v140_v8 = vpop.eup %139 }
  0x35   :  { %v142_v9 = vpop.eup %141  ;;  %v51_v10 = vadd.f32 1.0, %v140_v8 }
  0x36   :  { %v144_v11 = vpop.eup %143  ;;  %v52_v12 = vadd.f32 1.0, %v142_v9 }
  0x37   :  { %v146_v14 = vpop.eup %145  ;;  %147 = vrcp.f32 %v51_v10  ;;  %v68_v15 = vadd.f32 1.0, %v144_v11 }
  0x38   :  { %149 = vrcp.f32 %v52_v12  ;;  %v69_v16 = vadd.f32 1.0, %v146_v14 }
  0x39   :  { %151 = vrcp.f32 %v68_v15 }
  0x3a   :  { %153 = vrcp.f32 %v69_v16 }
  0x41   :  { %v148_v20 = vpop.eup %147 }
  0x42   :  { %v150_v21 = vpop.eup %149  ;;  %58 = vst.msk [vmem:[#allocation8] sm:$0xff] %vm57_vm0, %v148_v20 }
  0x43   :  { %v152_v22 = vpop.eup %151  ;;  %59 = vst.msk [vmem:[#allocation8 + $0x8] sm:$0xff] %vm57_vm0, %v150_v21 }
  0x44   :  { %v154_v23 = vpop.eup %153  ;;  %v85_v24 = vsel %vm83_vm1, 0.0, %v152_v22 }
  0x45   :  { %210 = shalt.err (!%p207_p6)
}
  0x46   :  { %s211_s16 = scalar_lea.hbm %s352_s3, 256 }
  0x47   :  { %p212_p7 = scmp.ne.s32.totalorder %s352_s3, %s211_s16  ;;  %p215_p8 = scmp.lt.u32.totalorder %s211_s16, %s352_s3 }
  0x49   :  { %p217_p9 = pnand %p215_p8, %p212_p7 }
  0x4b   :  { %220 = shalt.err (!%p217_p9)
}
  0x4c   :  { %118 = dma.vmem_to_hbm [thread:$0]  %s113_s10, 256, %s352_s3, [#allocation9], %s252_s22, %s252_s22, %s253_s23   ;;  %87 = vst.msk [vmem:[#allocation7] sm:$0xff] %vm57_vm0, %v85_v24  ;;  %v86_v25 = vsel %vm84_vm2, 0.0, %v154_v23 }
  0x4d   :  { %88 = vst.msk [vmem:[#allocation7 + $0x8] sm:$0xff] %vm57_vm0, %v86_v25  ;;  %s221_s25 = scalar_lea.vmem %s309_s12, 256  ;;  %p226_p11 = scmp.lt.s32.totalorder %s309_s12, %s309_s12 }
  0x4e   :  { %p222_p10 = scmp.ne.s32.totalorder %s309_s12, %s221_s25  ;;  %p227_p12 = scmp.lt.s32.totalorder %s221_s25, %s221_s25 }
  0x50   :  { %p228_p13 = por %p227_p12, %p226_p11 }
  0x52   :  { %p229_p0 = pnand %p228_p13, %p222_p10 }
  0x54   :  { %232 = shalt.err (!%p229_p0)
}
  0x55   :  { %s233_s28 = scalar_lea.hbm %s351_s2, 256 }
  0x56   :  { %p234_p1 = scmp.ne.s32.totalorder %s351_s2, %s233_s28  ;;  %p237_p2 = scmp.lt.u32.totalorder %s233_s28, %s351_s2 }
  0x58   :  { %p239_p3 = pnand %p237_p2, %p234_p1 }
  0x5a   :  { %242 = shalt.err (!%p239_p3)
}
  0x5b   :  { %106 = dma.vmem_to_hbm [thread:$0]  %s309_s12, 256, %s351_s2, [#allocation4], %s252_s22, %s252_s22, %s253_s23  }
  0x5c   :  { %247 = dma.done.wait [#allocation4], 256  }
  0x5d   :  { %248 = vsyncadd [#allocation4], 4294967040 }
  0x5e   :  { %249 = dma.done.wait [#allocation9], 256  }
  0x5f   :  { %250 = vsyncadd [#allocation9], 4294967040 }
  0x60   :  { %125 = vsyncpa [#allocation3], 1 }
  0x61   :  { %126 = vsyncpa [#allocation6], 1 }
  0x62   :  { %127 = vsyncpa [#allocation4], 1 }
  0x63   :  { %128 = vsyncpa [#allocation9], 1 }

</bundles_post_ra>
